<compile_context>
chip_gen: v7x
topology: tpu7x:2x2x1
jax: 0.10.0
libtpu: 0.0.40
codegen_flags: <defaults>
</compile_context>

<pallas_src>
import jax
import jax.numpy as jnp
from jax.experimental import pallas as pl
from jax.experimental.pallas import tpu as pltpu

_LANE = 128      # lane width (last-dim vreg extent)
_SUBLANE = 8     # f32 sublane height


def _round_up(n, m):
    return ((n + m - 1) // m) * m


def _layout(obs_size, hidden_size, n_actions):
    """Row/column layout of the packed parameter slab (all offsets static)."""
    hp = _round_up(max(hidden_size, 1), _LANE)    # padded hidden width
    np_ = _round_up(max(n_actions, 1), _LANE)     # padded output width
    cw = max(hp, np_)                             # slab lane width
    off_w1 = 0
    off_b1 = _round_up(obs_size, _SUBLANE)        # 8-aligned row starts
    off_w2 = off_b1 + _SUBLANE
    off_b2 = off_w2 + hp                          # hp % 8 == 0
    total_rows = off_b2 + _SUBLANE
    return hp, np_, cw, off_w1, off_b1, off_w2, off_b2, total_rows


def prepare_params(w1, b1, w2, b2):
    """One-time packing (outside the hot path): zero-pad to lane width and
    stack w1/b1/w2/b2 into a single (rows, 128*k) f32 buffer."""
    obs_size, hidden_size = w1.shape
    _, n_actions = w2.shape
    _, _, cw, off_w1, off_b1, off_w2, off_b2, total = _layout(
        obs_size, hidden_size, n_actions)
    p = jnp.zeros((total, cw), jnp.float32)
    p = p.at[off_w1:off_w1 + obs_size, :hidden_size].set(w1)
    p = p.at[off_b1, :hidden_size].set(b1.reshape(-1))
    p = p.at[off_w2:off_w2 + hidden_size, :n_actions].set(w2)
    p = p.at[off_b2, :n_actions].set(b2.reshape(-1))
    return p


def _make_mlp_kernel(obs_size, hp, np_, off_w1, off_b1, off_w2, off_b2):
    def kernel(x_ref, p_ref, o_ref):
        # Static, sublane-aligned views into the packed parameter slab.
        w1 = p_ref[off_w1:off_w1 + obs_size, :hp]       # (obs, hp)
        b1 = p_ref[off_b1:off_b1 + 1, :hp]              # (1, hp)
        w2 = p_ref[off_w2:off_w2 + hp, :np_]            # (hp, np_)
        b2 = p_ref[off_b2:off_b2 + 1, :np_]             # (1, np_)
        x = x_ref[...]                                  # (Bp, obs)
        # MXU matmuls (f32 accumulate) + VPU bias add / ReLU, all in f32.
        h = jnp.dot(x, w1, preferred_element_type=jnp.float32)
        h = jnp.maximum(h + b1, 0.0)                    # ReLU(x @ W1 + b1)
        y = jnp.dot(h, w2, preferred_element_type=jnp.float32)
        o_ref[...] = (y + b2).astype(o_ref.dtype)       # (Bp, np_) unmasked vst
    return kernel


def make_net_forward(obs_size, hidden_size, n_actions):
    """Returns a jitted forward(x, packed_params) -> (B, n_actions)."""
    hp, np_, _, off_w1, off_b1, off_w2, off_b2, _ = _layout(
        obs_size, hidden_size, n_actions)
    kernel = _make_mlp_kernel(obs_size, hp, np_, off_w1, off_b1, off_w2, off_b2)
    vmem = pltpu.MemorySpace.VMEM

    # TODO(synk): for large rollout batches, add a batch grid axis (tile ~512
    # rows) marked "parallel" so v7x's two TensorCores split the work;
    # unnecessary at these sizes (single-invocation is faster).

    @jax.jit
    def forward(x, packed_params):
        B = x.shape[0]
        bp = max(_SUBLANE, _round_up(B, _SUBLANE))
        # Static Python check: no pad op is emitted when B is already aligned.
        x_p = x if bp == B else jnp.pad(x, ((0, bp - B), (0, 0)))
        out = pl.pallas_call(
            kernel,
            out_shape=jax.ShapeDtypeStruct((bp, np_), jnp.float32),
            # No grid: one kernel invocation, both operands fully resident in
            # VMEM, exactly two input DMAs (x + packed params).
            in_specs=[
                pl.BlockSpec(memory_space=vmem),   # x
                pl.BlockSpec(memory_space=vmem),   # packed w1|b1|w2|b2
            ],
            out_specs=pl.BlockSpec(memory_space=vmem),
        )(x_p, packed_params)
        if bp == B and np_ == n_actions:
            return out
        return out[:B, :n_actions]   # logical module output

    return forward


def init_params(key, obs_size, hidden_size, n_actions):
    """Deterministic init mirroring nn.Linear shapes.
    torch weight is (out, in); we store the transpose (in, out) for the kernel."""
    k1, k2, k3, k4 = jax.random.split(key, 4)
    lim1 = 1.0 / jnp.sqrt(obs_size)
    lim2 = 1.0 / jnp.sqrt(hidden_size)
    w1 = jax.random.uniform(k1, (obs_size, hidden_size), jnp.float32, -lim1, lim1)
    b1 = jax.random.uniform(k2, (1, hidden_size), jnp.float32, -lim1, lim1)
    w2 = jax.random.uniform(k3, (hidden_size, n_actions), jnp.float32, -lim2, lim2)
    b2 = jax.random.uniform(k4, (1, n_actions), jnp.float32, -lim2, lim2)
    return w1, b1, w2, b2


if __name__ == "__main__":
    # FrozenLake-4x4: obs_size=16 (one-hot state), n_actions=4; hidden=32.
    obs_size, hidden_size, n_actions = 16, 32, 4
    batch = 16   # sublane-aligned batch so the vregs are not mostly padding

    key = jax.random.PRNGKey(0)
    kx, kx2, kp = jax.random.split(key, 3)
    x = jax.random.normal(kx, (batch, obs_size), jnp.float32)
    w1, b1, w2, b2 = init_params(kp, obs_size, hidden_size, n_actions)

    # One-time parameter packing (hoisted out of the per-call hot path).
    packed = prepare_params(w1, b1, w2, b2)
    packed = jax.block_until_ready(packed)

    fwd = make_net_forward(obs_size, hidden_size, n_actions)

    out = fwd(x, packed)
    jax.block_until_ready(out)

    # Pure-JAX reference (same math as torch: relu(x @ W1 + b1) @ W2 + b2).
    ref = jnp.maximum(x @ w1 + b1, 0.0) @ w2 + b2
    assert out.shape == (batch, n_actions)
    assert jnp.allclose(out, ref, atol=1e-5, rtol=1e-5)

    # Also exercise a tiny, non-aligned batch (B=2) through the padding path.
    x2 = jax.random.normal(kx2, (2, obs_size), jnp.float32)
    out2 = fwd(x2, packed)
    jax.block_until_ready(out2)
    ref2 = jnp.maximum(x2 @ w1 + b1, 0.0) @ w2 + b2
    assert out2.shape == (2, n_actions)
    assert jnp.allclose(out2, ref2, atol=1e-5, rtol=1e-5)

    print("KERNEL_OK")
</pallas_src>

<mosaic_0001>
module attributes {stable_mosaic.version = 11 : i64} {
  func.func @kernel(%arg0: memref<16x16xf32, #tpu.memory_space<vmem>>, %arg1: memref<160x128xf32, #tpu.memory_space<vmem>>, %arg2: memref<16x128xf32, #tpu.memory_space<vmem>>) attributes {dimension_semantics = [], scalar_prefetch = 0 : i64, scratch_operands = 0 : i64, tpu.core_type = #tpu.core_type<tc>} {
    %c0 = arith.constant 0 : index
    %c0_0 = arith.constant 0 : index
    %0 = vector.load %arg1[%c0, %c0_0] : memref<160x128xf32, #tpu.memory_space<vmem>>, vector<16x128xf32>
    %c16 = arith.constant 16 : index
    %c0_1 = arith.constant 0 : index
    %1 = vector.load %arg1[%c16, %c0_1] : memref<160x128xf32, #tpu.memory_space<vmem>>, vector<1x128xf32>
    %c24 = arith.constant 24 : index
    %c0_2 = arith.constant 0 : index
    %2 = vector.load %arg1[%c24, %c0_2] : memref<160x128xf32, #tpu.memory_space<vmem>>, vector<128x128xf32>
    %c152 = arith.constant 152 : index
    %c0_3 = arith.constant 0 : index
    %3 = vector.load %arg1[%c152, %c0_3] : memref<160x128xf32, #tpu.memory_space<vmem>>, vector<1x128xf32>
    %c0_4 = arith.constant 0 : index
    %c0_5 = arith.constant 0 : index
    %4 = vector.load %arg0[%c0_4, %c0_5] : memref<16x16xf32, #tpu.memory_space<vmem>>, vector<16x16xf32>
    %cst = arith.constant dense<0.000000e+00> : vector<16x128xf32>
    %5 = tpu.matmul %4, %0, %cst {dimension_numbers = #tpu.dot_dimension_numbers<[1], [0], [0], [1], [0, 0, 1, 1], [], []>} : vector<16x16xf32>, vector<16x128xf32>, vector<16x128xf32> -> vector<16x128xf32>
    %6 = vector.broadcast %1 : vector<1x128xf32> to vector<16x128xf32>
    %7 = arith.addf %5, %6 : vector<16x128xf32>
    %cst_6 = arith.constant 0.000000e+00 : f32
    %8 = vector.broadcast %cst_6 : f32 to vector<16x128xf32>
    %9 = arith.maximumf %7, %8 : vector<16x128xf32>
    %cst_7 = arith.constant dense<0.000000e+00> : vector<16x128xf32>
    %10 = tpu.matmul %9, %2, %cst_7 {dimension_numbers = #tpu.dot_dimension_numbers<[1], [0], [0], [1], [0, 0, 1, 1], [], []>} : vector<16x128xf32>, vector<128x128xf32>, vector<16x128xf32> -> vector<16x128xf32>
    %11 = vector.broadcast %3 : vector<1x128xf32> to vector<16x128xf32>
    %12 = arith.addf %10, %11 : vector<16x128xf32>
    %c0_8 = arith.constant 0 : index
    %c0_9 = arith.constant 0 : index
    %13 = vector.load %arg2[%c0_8, %c0_9] : memref<16x128xf32, #tpu.memory_space<vmem>>, vector<16x128xf32>
    tpu.vector_store %arg2[%c0_8, %c0_9], %12 {strides = array<i32>} : memref<16x128xf32, #tpu.memory_space<vmem>>, vector<16x128xf32>,
    return
  }
}

</mosaic_0001>

<bundles_post_ra>
// kernel: forward.1
= control target key start
LH: loop header
LB: loop body
LE: loop exit
PB: predicated region body
PF: predicated region fallthrough
CT: control target
= control target key end

     0   :  { %7 = vsyncpa [#allocation3], 0  ;;  %s443_s0 = inlined_call_operand.hbm [shape: f32[16,16], index: 0, kind: input, shape index: {}]   ;;  %s444_s1 = inlined_call_operand.hbm [shape: f32[160,128], index: 1, kind: input, shape index: {}]   ;;  %s445_s2 = inlined_call_operand.vmem [shape: f32[16,128], index: 2, kind: output, shape index: {}]  }
   0x1   :  { %8 = vsyncpa [#allocation5], 0  ;;  %s392_s9 = smov [#allocation2]   ;;  %s344_s13 = scalar_lea.hbm %s443_s0, 256 }
   0x2   :  { %s14_s10 = sshll.u32 %s392_s9, 4  ;;  %p345_p0 = scmp.ne.s32.totalorder %s443_s0, %s344_s13  ;;  %s15_s10 = int_to_ptr.vmem [resolvable:$true] %s14_s10 }
   0x3   :  { %p348_p1 = scmp.lt.u32.totalorder %s344_s13, %s443_s0 }
   0x5   :  { %p350_p2 = pnand %p348_p1, %p345_p0 }
   0x7   :  { %353 = shalt.err (!%p350_p2)
}
   0x8   :  { %s354_s18 = scalar_lea.vmem %s15_s10, 256  ;;  %p359_p4 = scmp.lt.s32.totalorder %s15_s10, %s15_s10 }
   0x9   :  { %p355_p3 = scmp.ne.s32.totalorder %s15_s10, %s354_s18  ;;  %p360_p5 = scmp.lt.s32.totalorder %s354_s18, %s354_s18 }
   0xb   :  { %p361_p6 = por %p360_p5, %p359_p4 }
   0xd   :  { %p362_p7 = pnand %p361_p6, %p355_p3 }
   0xf   :  { %365 = shalt.err (!%p362_p7)
}
  0x10   :  { %s393_s19 = smov 128   ;;  %s394_s20 = smov 8  }
  0x11   :  { %20 = dma.hbm_to_vmem [thread:$0]  %s443_s0, 256, %s15_s10, [#allocation3], %s393_s19, %s393_s19, %s394_s20  }
  0x12   :  { %s395_s23 = smov [#allocation4]   ;;  %s366_s27 = scalar_lea.hbm %s444_s1, 2560 }
  0x13   :  { %s26_s24 = sshll.u32 %s395_s23, 4  ;;  %p367_p8 = scmp.ne.s32.totalorder %s444_s1, %s366_s27  ;;  %s27_s24 = int_to_ptr.vmem [resolvable:$true] %s26_s24 }
  0x14   :  { %p370_p9 = scmp.lt.u32.totalorder %s366_s27, %s444_s1 }
  0x16   :  { %p372_p10 = pnand %p370_p9, %p367_p8 }
  0x18   :  { %375 = shalt.err (!%p372_p10)
}
  0x19   :  { %s376_s4 = scalar_lea.vmem %s27_s24, 2560  ;;  %p381_p12 = scmp.lt.s32.totalorder %s27_s24, %s27_s24 }
  0x1a   :  { %p377_p11 = scmp.ne.s32.totalorder %s27_s24, %s376_s4  ;;  %p382_p13 = scmp.lt.s32.totalorder %s376_s4, %s376_s4 }
  0x1c   :  { %p383_p0 = por %p382_p13, %p381_p12 }
  0x1e   :  { %p384_p1 = pnand %p383_p0, %p377_p11 }
  0x20   :  { %387 = shalt.err (!%p384_p1)
}
  0x21   :  { %32 = dma.hbm_to_vmem [thread:$0]  %s444_s1, 2560, %s27_s24, [#allocation5], %s393_s19, %s393_s19, %s394_s20  }
  0x22   :  { %388 = dma.done.wait [#allocation3], 256  }
  0x23   :  { %389 = vsyncadd [#allocation3], 4294967040 }
  0x24   :  { %390 = dma.done.wait [#allocation5], 2560  }
  0x25   :  { %391 = vsyncadd [#allocation5], 4294964736  ;;  %vm65_vm0 = vcmask 130048   ;;  %v39_v0 = vld [vmem:[#allocation4] sm:$0xff]  ;;  %v40_v1 = vld [vmem:[#allocation4 + $0x8] sm:$0xff] }
  0x26   :  { %v59_v2 = vld [vmem:[#allocation2] sm:$0xff]  ;;  %v304_v3 = vpack.c.bf16 %v40_v1, %v39_v0  ;;  %v42_v4 = vld [vmem:[#allocation4 + $0x18] sm:$0xff]  ;;  %v43_v5 = vld [vmem:[#allocation4 + $0x20] sm:$0xff] }
  0x27   :  { %266 = vmatprep.mubr.msk.f32.mxu0 %vm65_vm0, %v59_v2  ;;  %v308_v6 = vpack.c.bf16 %v43_v5, %v42_v4  ;;  %v44_v7 = vld [vmem:[#allocation4 + $0x28] sm:$0xff]  ;;  %v45_v8 = vld [vmem:[#allocation4 + $0x30] sm:$0xff]  ;;  %v46_v10 = vld [vmem:[#allocation4 + $0x38] sm:$0xff] }
  0x28   :  { %305 = vmatprep.subr.bf16.mxu0 %v304_v3  ;;  %v312_v9 = vpack.c.bf16 %v45_v8, %v44_v7  ;;  %v47_v11 = vld [vmem:[#allocation4 + $0x40] sm:$0xff]  ;;  %v60_v12 = vld [vmem:[#allocation2 + $0x8] sm:$0xff]  ;;  %v48_v14 = vld [vmem:[#allocation4 + $0x48] sm:$0xff] }
  0x29   :  { %307 = vmatpush3.bf16.msra.mxu0 %v304_v3  ;;  %309 = vmatprep.subr.bf16.mxu1 %v308_v6  ;;  %v316_v13 = vpack.c.bf16 %v47_v11, %v46_v10  ;;  %v49_v15 = vld [vmem:[#allocation4 + $0x50] sm:$0xff]  ;;  %v50_v17 = vld [vmem:[#allocation4 + $0x58] sm:$0xff]  ;;  %v51_v18 = vld [vmem:[#allocation4 + $0x60] sm:$0xff] }
  0x2a   :  { %311 = vmatpush3.bf16.msra.mxu1 %v308_v6  ;;  %v320_v16 = vpack.c.bf16 %v49_v15, %v48_v14  ;;  %v324_v19 = vpack.c.bf16 %v51_v18, %v50_v17  ;;  %v52_v20 = vld [vmem:[#allocation4 + $0x68] sm:$0xff]  ;;  %v53_v21 = vld [vmem:[#allocation4 + $0x70] sm:$0xff]  ;;  %v54_v23 = vld [vmem:[#allocation4 + $0x78] sm:$0xff] }
  0x2b   :  { %313 = vmatprep.subr.bf16.mxu1 %v312_v9  ;;  %v328_v22 = vpack.c.bf16 %v53_v21, %v52_v20  ;;  %v55_v24 = vld [vmem:[#allocation4 + $0x80] sm:$0xff]  ;;  %v56_v26 = vld [vmem:[#allocation4 + $0x88] sm:$0xff]  ;;  %v57_v27 = vld [vmem:[#allocation4 + $0x90] sm:$0xff] }
  0x2c   :  { %267 = vmatmul.mubr.msk.f32.vlgmr.msra.gmra.mrb[0].mxu0 %vm65_vm0, %v60_v12  ;;  %v332_v25 = vpack.c.bf16 %v55_v24, %v54_v23  ;;  %v336_v28 = vpack.c.bf16 %v57_v27, %v56_v26  ;;  %v236_v29 = vld [vmem:[#allocation4 + $0x10] ss:$0 sm:$0xff]  ;;  %v239_v36 = vld [vmem:[#allocation4 + $0x98] ss:$0 sm:$0xff] }
  0x2e   :  { %315 = vmatpush3.bf16.msra.mxu1 %v312_v9 }
  0x2f   :  { %317 = vmatprep.subr.bf16.mxu1 %v316_v13 }
  0x32   :  { %319 = vmatpush3.bf16.msra.mxu1 %v316_v13 }
  0x33   :  { %321 = vmatprep.subr.bf16.mxu1 %v320_v16 }
  0x36   :  { %323 = vmatpush3.bf16.msra.mxu1 %v320_v16 }
  0x37   :  { %325 = vmatprep.subr.bf16.mxu1 %v324_v19 }
  0x3a   :  { %327 = vmatpush3.bf16.msra.mxu1 %v324_v19 }
  0x3b   :  { %329 = vmatprep.subr.bf16.mxu1 %v328_v22 }
  0x3e   :  { %331 = vmatpush3.bf16.msra.mxu1 %v328_v22 }
  0x3f   :  { %333 = vmatprep.subr.bf16.mxu1 %v332_v25 }
  0x42   :  { %335 = vmatpush3.bf16.msra.mxu1 %v332_v25 }
  0x43   :  { %337 = vmatprep.subr.bf16.mxu1 %v336_v28 }
  0x46   :  { %339 = vmatpush3.bf16.msra.mxu1 %v336_v28 }
  0xff   :  { %v268_v30 = vpop.f32.mrb[0].mxu0 }
 0x100   :  { %v144_v31 = vadd.f32 %v268_v30, %v236_v29  ;;  %v138_v32 = vpop.f32.mrb[1].mxu0 }
 0x101   :  { %v139_v33 = vadd.f32 %v236_v29, %v138_v32 }
 0x102   :  { %v148_v35 = vmax.f32 %v144_v31, 0.0 }
 0x103   :  { %v147_v34 = vmax.f32 %v139_v33, 0.0 }
 0x105   :  { %301 = vmatprep.mubr.f32.mxu1 %v147_v34 }
 0x106   :  { %302 = vmatmul.mubr.f32.vlgmr.msra.gmra.mrb[0].mxu1 %v148_v35 }
 0x1d9   :  { %v303_v37 = vpop.f32.mrb[0].mxu1 }
 0x1da   :  { %v225_v38 = vadd.f32 %v303_v37, %v239_v36  ;;  %v219_v39 = vpop.f32.mrb[1].mxu1 }
 0x1db   :  { %v220_v40 = vadd.f32 %v239_v36, %v219_v39 }
 0x1dc   :  { %229 = vst [vmem:[%s445_s2 + $0x8] sm:$0xff] %v225_v38 }
 0x1dd   :  { %228 = vst [vmem:[%s445_s2] sm:$0xff] %v220_v40 }
 0x1de   :  { %234 = vsyncpa [#allocation3], 1 }
 0x1df   :  { %235 = vsyncpa [#allocation5], 1 }

</bundles_post_ra>
